<compile_context>
chip_gen: v5e
topology: v5e:2x2
jax: 0.10.0
libtpu: 0.0.40
codegen_flags: <defaults>
</compile_context>

<pallas_src>
import functools

import jax
import jax.numpy as jnp
from jax.experimental import pallas as pl
from jax.experimental.pallas import tpu as pltpu


def _sparse_mlcce_kernel(preds_ref, target_ref, out_ref, *, mask_zero):
    x = preds_ref[...].astype(jnp.float32)          # (tile_n, C)
    tgt = target_ref[...]                           # (tile_n, S) int32
    tile_n, num_classes = x.shape
    num_spoes = tgt.shape[-1]

    big = jnp.float32(1e12)                         # matches torch 1000000000000.0
    col_ids = jax.lax.broadcasted_iota(jnp.int32, (tile_n, num_classes), 1)

    # ---- all_loss = logsumexp([preds (col 0 masked if mask_zero), 0]) --------
    x_all = jnp.where(col_ids == 0, -big, x) if mask_zero else x
    m_all = jnp.maximum(jnp.max(x_all, axis=-1, keepdims=True), 0.0)
    s_all = (jnp.sum(jnp.exp(x_all - m_all), axis=-1, keepdims=True)
             + jnp.exp(-m_all))                     # + appended zero logit
    all_loss = m_all + jnp.log(s_all)               # (tile_n, 1)

    # ---- gather preds at target indices (compare/select reduce), folding -----
    # each gathered value into online logsumexps.
    # pos_1 logsumexp starts with the appended 0 logit.
    m1 = jnp.zeros((tile_n, 1), jnp.float32)
    s1 = jnp.ones((tile_n, 1), jnp.float32)
    # pos_2 logsumexp: -big is a safe lower bound for every gathered value.
    m2 = jnp.full((tile_n, 1), -big, jnp.float32)
    s2 = jnp.zeros((tile_n, 1), jnp.float32)

    for s in range(num_spoes):
        idx = tgt[:, s:s + 1]                                        # (tile_n, 1)
        hit = col_ids == idx
        # idx == num_classes (the appended blank) has no match -> gathers 0.
        g = jnp.sum(jnp.where(hit, x, 0.0), axis=-1, keepdims=True)  # (tile_n, 1)
        if mask_zero:
            g1 = jnp.where(idx == 0, big, g)        # padding label -> masked out
            g2 = jnp.where(idx == 0, -big, g)
        else:
            g1, g2 = g, g

        v1 = -g1                                    # online LSE over {-pos_1}
        n1 = jnp.maximum(m1, v1)
        s1 = s1 * jnp.exp(m1 - n1) + jnp.exp(v1 - n1)
        m1 = n1

        n2 = jnp.maximum(m2, g2)                    # online LSE over {pos_2}
        s2 = s2 * jnp.exp(m2 - n2) + jnp.exp(g2 - n2)
        m2 = n2

    pos_loss = m1 + jnp.log(s1)                     # (tile_n, 1)
    lse_pos2 = m2 + jnp.log(s2)

    aux = jnp.clip(1.0 - jnp.exp(lse_pos2 - all_loss), 1e-7, 1.0)
    neg_loss = all_loss + jnp.log(aux)
    out_ref[...] = (pos_loss + neg_loss).astype(out_ref.dtype)


def _round_up(x, m):
    return (x + m - 1) // m * m


def _pick_tile_n(num_rows, num_classes, num_spoes, preds_itemsize):
    # Per-row VMEM footprint: 2 pipeline buffers for each input tile plus a few
    # f32 working copies of the (tile_n, C) block inside the kernel body.
    per_row = (2 * 2 * (num_classes * preds_itemsize + num_spoes * 4)
               + 4 * num_classes * 4)
    budget = 16 * 1024 * 1024   # conservative: leaves headroom on v7x (64 MiB VMEM)
    tile = budget // max(per_row, 1)
    tile = max(8, min(int(tile), 1024, _round_up(num_rows, 8)))
    return (tile // 8) * 8


def sparse_multilabel_categorical_crossentropy(preds, target, *, mask_zero=False):
    """preds: (bsz, heads, C) float logits (f32 or bf16);
    target: (bsz, heads, num_spoes) int indices in [0, C].
    Returns: (bsz, heads) float32 loss (no reduction), matching the PyTorch module."""
    bsz, heads, num_classes = preds.shape
    tb, th, num_spoes = target.shape
    assert (tb, th) == (bsz, heads)

    n_rows = bsz * heads
    preds2 = preds.reshape(n_rows, num_classes)
    target2 = target.reshape(n_rows, num_spoes).astype(jnp.int32)

    tile_n = _pick_tile_n(n_rows, num_classes, num_spoes, preds2.dtype.itemsize)
    n_pad = pl.cdiv(n_rows, tile_n) * tile_n
    if n_pad != n_rows:
        # Pad rows (values 0, index 0) — padded rows are dropped after the call.
        preds2 = jnp.pad(preds2, ((0, n_pad - n_rows), (0, 0)))
        target2 = jnp.pad(target2, ((0, n_pad - n_rows), (0, 0)))

    kernel = functools.partial(_sparse_mlcce_kernel, mask_zero=mask_zero)

    out = pl.pallas_call(
        kernel,
        out_shape=jax.ShapeDtypeStruct((n_pad, 1), jnp.float32),
        grid_spec=pltpu.PrefetchScalarGridSpec(
            num_scalar_prefetch=0,
            grid=(n_pad // tile_n,),
            in_specs=[
                pl.BlockSpec((tile_n, num_classes), lambda i: (i, 0)),
                pl.BlockSpec((tile_n, num_spoes), lambda i: (i, 0)),
            ],
            out_specs=pl.BlockSpec((tile_n, 1), lambda i: (i, 0)),
        ),
        compiler_params=pltpu.CompilerParams(
            # Per-block outputs -> no cross-step state -> safe to shard across
            # TensorCores (2x on v7x, neutral on v5e/v6e).
            dimension_semantics=("parallel",),
            # Above v5e's 16 MiB default scoped limit; well under v7x's 64 MiB.
            vmem_limit_bytes=48 * 1024 * 1024,
        ),
    )(preds2, target2)

    return out[:n_rows, 0].reshape(bsz, heads)


def _reference(preds, target, mask_zero=False):
    """Pure-JAX transliteration of the PyTorch forward."""
    preds = preds.astype(jnp.float32)
    zeros = jnp.zeros_like(preds[..., :1])
    preds = jnp.concatenate([preds, zeros], axis=-1)
    if mask_zero:
        infs = zeros + 1e12
        preds = jnp.concatenate([infs, preds[..., 1:]], axis=-1)
    pos_2 = jnp.take_along_axis(preds, target, axis=-1)
    pos_1 = jnp.concatenate([pos_2, zeros], axis=-1)
    if mask_zero:
        preds = jnp.concatenate([-infs, preds[..., 1:]], axis=-1)
        pos_2 = jnp.take_along_axis(preds, target, axis=-1)
    pos_loss = jax.scipy.special.logsumexp(-pos_1, axis=-1)
    all_loss = jax.scipy.special.logsumexp(preds, axis=-1)
    aux_loss = jax.scipy.special.logsumexp(pos_2, axis=-1) - all_loss
    aux_loss = jnp.clip(1.0 - jnp.exp(aux_loss), 1e-7, 1.0)
    neg_loss = all_loss + jnp.log(aux_loss)
    return pos_loss + neg_loss


if __name__ == "__main__":
    key = jax.random.PRNGKey(0)
    k1, k2 = jax.random.split(key)

    bsz, heads, seq_len, num_spoes = 2, 3, 16, 8
    num_classes = seq_len * seq_len                      # 256

    preds = jax.random.normal(k1, (bsz, heads, num_classes), dtype=jnp.float32)
    # Positive-label indices in [0, num_classes]; index == num_classes hits the
    # appended zero logit, index == 0 exercises the mask_zero padding path.
    target = jax.random.randint(k2, (bsz, heads, num_spoes), 0, num_classes + 1,
                                dtype=jnp.int32)

    ok = True
    for mask_zero in (False, True):
        loss = sparse_multilabel_categorical_crossentropy(
            preds, target, mask_zero=mask_zero)
        jax.block_until_ready(loss)
        ref = _reference(preds, target, mask_zero=mask_zero)
        ok = ok and bool(jnp.allclose(loss, ref, rtol=1e-4, atol=1e-4))

    assert ok, "kernel output does not match reference"
    print("KERNEL_OK")
</pallas_src>

<mosaic_0001>
module attributes {stable_mosaic.version = 11 : i64} {
  func.func @_sparse_mlcce_kernel(%arg0: i32, %arg1: memref<8x256xf32, #tpu.memory_space<vmem>>, %arg2: memref<8x8xi32, #tpu.memory_space<vmem>>, %arg3: memref<8x1xf32, #tpu.memory_space<vmem>>) attributes {dimension_semantics = [#tpu.dimension_semantics<parallel>], iteration_bounds = array<i64: 1>, scalar_prefetch = 0 : i64, scratch_operands = 0 : i64, tpu.core_type = #tpu.core_type<tc>, window_params = [{transform_indices = @transform_0, window_bounds = array<i64: 8, 256>}, {transform_indices = @transform_1, window_bounds = array<i64: 8, 8>}, {transform_indices = @transform_2, window_bounds = array<i64: 8, 1>}]} {
    %c0 = arith.constant 0 : index
    %c0_0 = arith.constant 0 : index
    %0 = vector.load %arg1[%c0, %c0_0] : memref<8x256xf32, #tpu.memory_space<vmem>>, vector<8x256xf32>
    %c0_1 = arith.constant 0 : index
    %c0_2 = arith.constant 0 : index
    %1 = vector.load %arg2[%c0_1, %c0_2] : memref<8x8xi32, #tpu.memory_space<vmem>>, vector<8x8xi32>
    %2 = tpu.iota {dimensions = array<i32: 1>} : vector<8x256xi32>
    %cst = arith.constant dense<0xFF800000> : vector<8xf32>
    %3 = vector.multi_reduction <maximumf>, %0, %cst [1] : vector<8x256xf32> to vector<8xf32>
    %4 = vector.shape_cast %3 : vector<8xf32> to vector<8x1xf32>
    %cst_3 = arith.constant 0.000000e+00 : f32
    %5 = vector.broadcast %cst_3 : f32 to vector<8x1xf32>
    %6 = arith.maximumf %4, %5 : vector<8x1xf32>
    %7 = vector.broadcast %6 : vector<8x1xf32> to vector<8x256xf32>
    %8 = arith.subf %0, %7 : vector<8x256xf32>
    %9 = math.exp %8 : vector<8x256xf32>
    %cst_4 = arith.constant dense<0.000000e+00> : vector<8xf32>
    %10 = vector.multi_reduction <add>, %9, %cst_4 [1] : vector<8x256xf32> to vector<8xf32>
    %11 = vector.shape_cast %10 : vector<8xf32> to vector<8x1xf32>
    %cst_5 = arith.constant 0.000000e+00 : f32
    %12 = vector.broadcast %cst_5 : f32 to vector<8x1xf32>
    %13 = arith.subf %12, %6 : vector<8x1xf32>
    %14 = math.exp %13 : vector<8x1xf32>
    %15 = arith.addf %11, %14 : vector<8x1xf32>
    %16 = math.log %15 : vector<8x1xf32>
    %17 = arith.addf %6, %16 : vector<8x1xf32>
    %cst_6 = arith.constant 0.000000e+00 : f32
    %18 = vector.broadcast %cst_6 : f32 to vector<8x1xf32>
    %cst_7 = arith.constant 1.000000e+00 : f32
    %19 = vector.broadcast %cst_7 : f32 to vector<8x1xf32>
    %cst_8 = arith.constant 0.000000e+00 : f32
    %cst_9 = arith.constant 9.99999995E+11 : f32
    %20 = arith.subf %cst_8, %cst_9 : f32
    %21 = vector.broadcast %20 : f32 to vector<8x1xf32>
    %cst_10 = arith.constant 0.000000e+00 : f32
    %22 = vector.broadcast %cst_10 : f32 to vector<8x1xf32>
    %23 = vector.extract_strided_slice %1 {offsets = [0, 0], sizes = [8, 1], strides = [1, 1]} : vector<8x8xi32> to vector<8x1xi32>
    %24 = vector.broadcast %23 : vector<8x1xi32> to vector<8x256xi32>
    %25 = arith.cmpi eq, %2, %24 : vector<8x256xi32>
    %cst_11 = arith.constant 0.000000e+00 : f32
    %26 = vector.broadcast %cst_11 : f32 to vector<8x256xf32>
    %27 = arith.select %25, %0, %26 : vector<8x256xi1>, vector<8x256xf32>
    %cst_12 = arith.constant dense<0.000000e+00> : vector<8xf32>
    %28 = vector.multi_reduction <add>, %27, %cst_12 [1] : vector<8x256xf32> to vector<8xf32>
    %29 = vector.shape_cast %28 : vector<8xf32> to vector<8x1xf32>
    %cst_13 = arith.constant 0.000000e+00 : f32
    %30 = vector.broadcast %cst_13 : f32 to vector<8x1xf32>
    %31 = arith.subf %30, %29 : vector<8x1xf32>
    %32 = arith.maximumf %18, %31 : vector<8x1xf32>
    %33 = arith.subf %18, %32 : vector<8x1xf32>
    %34 = math.exp %33 : vector<8x1xf32>
    %35 = arith.mulf %19, %34 : vector<8x1xf32>
    %36 = arith.subf %31, %32 : vector<8x1xf32>
    %37 = math.exp %36 : vector<8x1xf32>
    %38 = arith.addf %35, %37 : vector<8x1xf32>
    %39 = arith.maximumf %21, %29 : vector<8x1xf32>
    %40 = arith.subf %21, %39 : vector<8x1xf32>
    %41 = math.exp %40 : vector<8x1xf32>
    %42 = arith.mulf %22, %41 : vector<8x1xf32>
    %43 = arith.subf %29, %39 : vector<8x1xf32>
    %44 = math.exp %43 : vector<8x1xf32>
    %45 = arith.addf %42, %44 : vector<8x1xf32>
    %46 = vector.extract_strided_slice %1 {offsets = [0, 1], sizes = [8, 1], strides = [1, 1]} : vector<8x8xi32> to vector<8x1xi32>
    %47 = vector.broadcast %46 : vector<8x1xi32> to vector<8x256xi32>
    %48 = arith.cmpi eq, %2, %47 : vector<8x256xi32>
    %cst_14 = arith.constant 0.000000e+00 : f32
    %49 = vector.broadcast %cst_14 : f32 to vector<8x256xf32>
    %50 = arith.select %48, %0, %49 : vector<8x256xi1>, vector<8x256xf32>
    %cst_15 = arith.constant dense<0.000000e+00> : vector<8xf32>
    %51 = vector.multi_reduction <add>, %50, %cst_15 [1] : vector<8x256xf32> to vector<8xf32>
    %52 = vector.shape_cast %51 : vector<8xf32> to vector<8x1xf32>
    %cst_16 = arith.constant 0.000000e+00 : f32
    %53 = vector.broadcast %cst_16 : f32 to vector<8x1xf32>
    %54 = arith.subf %53, %52 : vector<8x1xf32>
    %55 = arith.maximumf %32, %54 : vector<8x1xf32>
    %56 = arith.subf %32, %55 : vector<8x1xf32>
    %57 = math.exp %56 : vector<8x1xf32>
    %58 = arith.mulf %38, %57 : vector<8x1xf32>
    %59 = arith.subf %54, %55 : vector<8x1xf32>
    %60 = math.exp %59 : vector<8x1xf32>
    %61 = arith.addf %58, %60 : vector<8x1xf32>
    %62 = arith.maximumf %39, %52 : vector<8x1xf32>
    %63 = arith.subf %39, %62 : vector<8x1xf32>
    %64 = math.exp %63 : vector<8x1xf32>
    %65 = arith.mulf %45, %64 : vector<8x1xf32>
    %66 = arith.subf %52, %62 : vector<8x1xf32>
    %67 = math.exp %66 : vector<8x1xf32>
    %68 = arith.addf %65, %67 : vector<8x1xf32>
    %69 = vector.extract_strided_slice %1 {offsets = [0, 2], sizes = [8, 1], strides = [1, 1]} : vector<8x8xi32> to vector<8x1xi32>
    %70 = vector.broadcast %69 : vector<8x1xi32> to vector<8x256xi32>
    %71 = arith.cmpi eq, %2, %70 : vector<8x256xi32>
    %cst_17 = arith.constant 0.000000e+00 : f32
    %72 = vector.broadcast %cst_17 : f32 to vector<8x256xf32>
    %73 = arith.select %71, %0, %72 : vector<8x256xi1>, vector<8x256xf32>
    %cst_18 = arith.constant dense<0.000000e+00> : vector<8xf32>
    %74 = vector.multi_reduction <add>, %73, %cst_18 [1] : vector<8x256xf32> to vector<8xf32>
    %75 = vector.shape_cast %74 : vector<8xf32> to vector<8x1xf32>
    %cst_19 = arith.constant 0.000000e+00 : f32
    %76 = vector.broadcast %cst_19 : f32 to vector<8x1xf32>
    %77 = arith.subf %76, %75 : vector<8x1xf32>
    %78 = arith.maximumf %55, %77 : vector<8x1xf32>
    %79 = arith.subf %55, %78 : vector<8x1xf32>
    %80 = math.exp %79 : vector<8x1xf32>
    %81 = arith.mulf %61, %80 : vector<8x1xf32>
    %82 = arith.subf %77, %78 : vector<8x1xf32>
    %83 = math.exp %82 : vector<8x1xf32>
    %84 = arith.addf %81, %83 : vector<8x1xf32>
    %85 = arith.maximumf %62, %75 : vector<8x1xf32>
    %86 = arith.subf %62, %85 : vector<8x1xf32>
    %87 = math.exp %86 : vector<8x1xf32>
    %88 = arith.mulf %68, %87 : vector<8x1xf32>
    %89 = arith.subf %75, %85 : vector<8x1xf32>
    %90 = math.exp %89 : vector<8x1xf32>
    %91 = arith.addf %88, %90 : vector<8x1xf32>
    %92 = vector.extract_strided_slice %1 {offsets = [0, 3], sizes = [8, 1], strides = [1, 1]} : vector<8x8xi32> to vector<8x1xi32>
    %93 = vector.broadcast %92 : vector<8x1xi32> to vector<8x256xi32>
    %94 = arith.cmpi eq, %2, %93 : vector<8x256xi32>
    %cst_20 = arith.constant 0.000000e+00 : f32
    %95 = vector.broadcast %cst_20 : f32 to vector<8x256xf32>
    %96 = arith.select %94, %0, %95 : vector<8x256xi1>, vector<8x256xf32>
    %cst_21 = arith.constant dense<0.000000e+00> : vector<8xf32>
    %97 = vector.multi_reduction <add>, %96, %cst_21 [1] : vector<8x256xf32> to vector<8xf32>
    %98 = vector.shape_cast %97 : vector<8xf32> to vector<8x1xf32>
    %cst_22 = arith.constant 0.000000e+00 : f32
    %99 = vector.broadcast %cst_22 : f32 to vector<8x1xf32>
    %100 = arith.subf %99, %98 : vector<8x1xf32>
    %101 = arith.maximumf %78, %100 : vector<8x1xf32>
    %102 = arith.subf %78, %101 : vector<8x1xf32>
    %103 = math.exp %102 : vector<8x1xf32>
    %104 = arith.mulf %84, %103 : vector<8x1xf32>
    %105 = arith.subf %100, %101 : vector<8x1xf32>
    %106 = math.exp %105 : vector<8x1xf32>
    %107 = arith.addf %104, %106 : vector<8x1xf32>
    %108 = arith.maximumf %85, %98 : vector<8x1xf32>
    %109 = arith.subf %85, %108 : vector<8x1xf32>
    %110 = math.exp %109 : vector<8x1xf32>
    %111 = arith.mulf %91, %110 : vector<8x1xf32>
    %112 = arith.subf %98, %108 : vector<8x1xf32>
    %113 = math.exp %112 : vector<8x1xf32>
    %114 = arith.addf %111, %113 : vector<8x1xf32>
    %115 = vector.extract_strided_slice %1 {offsets = [0, 4], sizes = [8, 1], strides = [1, 1]} : vector<8x8xi32> to vector<8x1xi32>
    %116 = vector.broadcast %115 : vector<8x1xi32> to vector<8x256xi32>
    %117 = arith.cmpi eq, %2, %116 : vector<8x256xi32>
    %cst_23 = arith.constant 0.000000e+00 : f32
    %118 = vector.broadcast %cst_23 : f32 to vector<8x256xf32>
    %119 = arith.select %117, %0, %118 : vector<8x256xi1>, vector<8x256xf32>
    %cst_24 = arith.constant dense<0.000000e+00> : vector<8xf32>
    %120 = vector.multi_reduction <add>, %119, %cst_24 [1] : vector<8x256xf32> to vector<8xf32>
    %121 = vector.shape_cast %120 : vector<8xf32> to vector<8x1xf32>
    %cst_25 = arith.constant 0.000000e+00 : f32
    %122 = vector.broadcast %cst_25 : f32 to vector<8x1xf32>
    %123 = arith.subf %122, %121 : vector<8x1xf32>
    %124 = arith.maximumf %101, %123 : vector<8x1xf32>
    %125 = arith.subf %101, %124 : vector<8x1xf32>
    %126 = math.exp %125 : vector<8x1xf32>
    %127 = arith.mulf %107, %126 : vector<8x1xf32>
    %128 = arith.subf %123, %124 : vector<8x1xf32>
    %129 = math.exp %128 : vector<8x1xf32>
    %130 = arith.addf %127, %129 : vector<8x1xf32>
    %131 = arith.maximumf %108, %121 : vector<8x1xf32>
    %132 = arith.subf %108, %131 : vector<8x1xf32>
    %133 = math.exp %132 : vector<8x1xf32>
    %134 = arith.mulf %114, %133 : vector<8x1xf32>
    %135 = arith.subf %121, %131 : vector<8x1xf32>
    %136 = math.exp %135 : vector<8x1xf32>
    %137 = arith.addf %134, %136 : vector<8x1xf32>
    %138 = vector.extract_strided_slice %1 {offsets = [0, 5], sizes = [8, 1], strides = [1, 1]} : vector<8x8xi32> to vector<8x1xi32>
    %139 = vector.broadcast %138 : vector<8x1xi32> to vector<8x256xi32>
    %140 = arith.cmpi eq, %2, %139 : vector<8x256xi32>
    %cst_26 = arith.constant 0.000000e+00 : f32
    %141 = vector.broadcast %cst_26 : f32 to vector<8x256xf32>
    %142 = arith.select %140, %0, %141 : vector<8x256xi1>, vector<8x256xf32>
    %cst_27 = arith.constant dense<0.000000e+00> : vector<8xf32>
    %143 = vector.multi_reduction <add>, %142, %cst_27 [1] : vector<8x256xf32> to vector<8xf32>
    %144 = vector.shape_cast %143 : vector<8xf32> to vector<8x1xf32>
    %cst_28 = arith.constant 0.000000e+00 : f32
    %145 = vector.broadcast %cst_28 : f32 to vector<8x1xf32>
    %146 = arith.subf %145, %144 : vector<8x1xf32>
    %147 = arith.maximumf %124, %146 : vector<8x1xf32>
    %148 = arith.subf %124, %147 : vector<8x1xf32>
    %149 = math.exp %148 : vector<8x1xf32>
    %150 = arith.mulf %130, %149 : vector<8x1xf32>
    %151 = arith.subf %146, %147 : vector<8x1xf32>
    %152 = math.exp %151 : vector<8x1xf32>
    %153 = arith.addf %150, %152 : vector<8x1xf32>
    %154 = arith.maximumf %131, %144 : vector<8x1xf32>
    %155 = arith.subf %131, %154 : vector<8x1xf32>
    %156 = math.exp %155 : vector<8x1xf32>
    %157 = arith.mulf %137, %156 : vector<8x1xf32>
    %158 = arith.subf %144, %154 : vector<8x1xf32>
    %159 = math.exp %158 : vector<8x1xf32>
    %160 = arith.addf %157, %159 : vector<8x1xf32>
    %161 = vector.extract_strided_slice %1 {offsets = [0, 6], sizes = [8, 1], strides = [1, 1]} : vector<8x8xi32> to vector<8x1xi32>
    %162 = vector.broadcast %161 : vector<8x1xi32> to vector<8x256xi32>
    %163 = arith.cmpi eq, %2, %162 : vector<8x256xi32>
    %cst_29 = arith.constant 0.000000e+00 : f32
    %164 = vector.broadcast %cst_29 : f32 to vector<8x256xf32>
    %165 = arith.select %163, %0, %164 : vector<8x256xi1>, vector<8x256xf32>
    %cst_30 = arith.constant dense<0.000000e+00> : vector<8xf32>
    %166 = vector.multi_reduction <add>, %165, %cst_30 [1] : vector<8x256xf32> to vector<8xf32>
    %167 = vector.shape_cast %166 : vector<8xf32> to vector<8x1xf32>
    %cst_31 = arith.constant 0.000000e+00 : f32
    %168 = vector.broadcast %cst_31 : f32 to vector<8x1xf32>
    %169 = arith.subf %168, %167 : vector<8x1xf32>
    %170 = arith.maximumf %147, %169 : vector<8x1xf32>
    %171 = arith.subf %147, %170 : vector<8x1xf32>
    %172 = math.exp %171 : vector<8x1xf32>
    %173 = arith.mulf %153, %172 : vector<8x1xf32>
    %174 = arith.subf %169, %170 : vector<8x1xf32>
    %175 = math.exp %174 : vector<8x1xf32>
    %176 = arith.addf %173, %175 : vector<8x1xf32>
    %177 = arith.maximumf %154, %167 : vector<8x1xf32>
    %178 = arith.subf %154, %177 : vector<8x1xf32>
    %179 = math.exp %178 : vector<8x1xf32>
    %180 = arith.mulf %160, %179 : vector<8x1xf32>
    %181 = arith.subf %167, %177 : vector<8x1xf32>
    %182 = math.exp %181 : vector<8x1xf32>
    %183 = arith.addf %180, %182 : vector<8x1xf32>
    %184 = vector.extract_strided_slice %1 {offsets = [0, 7], sizes = [8, 1], strides = [1, 1]} : vector<8x8xi32> to vector<8x1xi32>
    %185 = vector.broadcast %184 : vector<8x1xi32> to vector<8x256xi32>
    %186 = arith.cmpi eq, %2, %185 : vector<8x256xi32>
    %cst_32 = arith.constant 0.000000e+00 : f32
    %187 = vector.broadcast %cst_32 : f32 to vector<8x256xf32>
    %188 = arith.select %186, %0, %187 : vector<8x256xi1>, vector<8x256xf32>
    %cst_33 = arith.constant dense<0.000000e+00> : vector<8xf32>
    %189 = vector.multi_reduction <add>, %188, %cst_33 [1] : vector<8x256xf32> to vector<8xf32>
    %190 = vector.shape_cast %189 : vector<8xf32> to vector<8x1xf32>
    %cst_34 = arith.constant 0.000000e+00 : f32
    %191 = vector.broadcast %cst_34 : f32 to vector<8x1xf32>
    %192 = arith.subf %191, %190 : vector<8x1xf32>
    %193 = arith.maximumf %170, %192 : vector<8x1xf32>
    %194 = arith.subf %170, %193 : vector<8x1xf32>
    %195 = math.exp %194 : vector<8x1xf32>
    %196 = arith.mulf %176, %195 : vector<8x1xf32>
    %197 = arith.subf %192, %193 : vector<8x1xf32>
    %198 = math.exp %197 : vector<8x1xf32>
    %199 = arith.addf %196, %198 : vector<8x1xf32>
    %200 = arith.maximumf %177, %190 : vector<8x1xf32>
    %201 = arith.subf %177, %200 : vector<8x1xf32>
    %202 = math.exp %201 : vector<8x1xf32>
    %203 = arith.mulf %183, %202 : vector<8x1xf32>
    %204 = arith.subf %190, %200 : vector<8x1xf32>
    %205 = math.exp %204 : vector<8x1xf32>
    %206 = arith.addf %203, %205 : vector<8x1xf32>
    %207 = math.log %199 : vector<8x1xf32>
    %208 = arith.addf %193, %207 : vector<8x1xf32>
    %209 = math.log %206 : vector<8x1xf32>
    %210 = arith.addf %200, %209 : vector<8x1xf32>
    %211 = arith.subf %210, %17 : vector<8x1xf32>
    %212 = math.exp %211 : vector<8x1xf32>
    %cst_35 = arith.constant 1.000000e+00 : f32
    %213 = vector.broadcast %cst_35 : f32 to vector<8x1xf32>
    %214 = arith.subf %213, %212 : vector<8x1xf32>
    %cst_36 = arith.constant 1.000000e-07 : f32
    %cst_37 = arith.constant 1.000000e+00 : f32
    %215 = vector.broadcast %cst_36 : f32 to vector<8x1xf32>
    %216 = arith.maximumf %215, %214 : vector<8x1xf32>
    %217 = vector.broadcast %cst_37 : f32 to vector<8x1xf32>
    %218 = arith.minimumf %217, %216 : vector<8x1xf32>
    %219 = math.log %218 : vector<8x1xf32>
    %220 = arith.addf %17, %219 : vector<8x1xf32>
    %221 = arith.addf %208, %220 : vector<8x1xf32>
    %c0_38 = arith.constant 0 : index
    %c0_39 = arith.constant 0 : index
    %222 = vector.load %arg3[%c0_38, %c0_39] : memref<8x1xf32, #tpu.memory_space<vmem>>, vector<8x1xf32>
    tpu.vector_store %arg3[%c0_38, %c0_39], %221 {strides = array<i32>} : memref<8x1xf32, #tpu.memory_space<vmem>>, vector<8x1xf32>,
    return
  }
  func.func @transform_0(%arg0: i32) -> (i32, i32) {
    %c0_i32 = arith.constant 0 : i32
    %c0_i32_0 = arith.constant 0 : i32
    return %arg0, %c0_i32 : i32, i32
  }
  func.func @transform_1(%arg0: i32) -> (i32, i32) {
    %c0_i32 = arith.constant 0 : i32
    %c0_i32_0 = arith.constant 0 : i32
    return %arg0, %c0_i32 : i32, i32
  }
  func.func @transform_2(%arg0: i32) -> (i32, i32) {
    %c0_i32 = arith.constant 0 : i32
    %c0_i32_0 = arith.constant 0 : i32
    return %arg0, %c0_i32 : i32, i32
  }
}

</mosaic_0001>

<bundles_post_ra>
// kernel: tpu_custom_call.1
= control target key start
LH: loop header
LB: loop body
LE: loop exit
PB: predicated region body
PF: predicated region fallthrough
CT: control target
= control target key end

     0   :  { %7 = vsyncpa [#allocation3], 0  ;;  %s596_s0 = inlined_call_operand.hbm [shape: f32[8,256], index: 0, kind: input, shape index: {}]   ;;  %s597_s1 = inlined_call_operand.hbm [shape: s32[8,8], index: 1, kind: input, shape index: {}]   ;;  %s598_s2 = inlined_call_operand.vmem [shape: f32[8,1], index: 2, kind: output, shape index: {}]  }
   0x1   :  { %s14_s11 = sshll.u32 %s596_s0, 4  ;;  %s15_s11 = int_to_ptr.hbm [resolvable:$true] %s14_s11 }
   0x2   :  { %8 = vsyncpa [#allocation5], 0  ;;  %s471_s12 = smov [#allocation2]   ;;  %s25_s16 = sshll.u32 %s597_s1, 4  ;;  %s26_s16 = int_to_ptr.hbm [resolvable:$true] %s25_s16 }
   0x3   :  { %s16_s13 = sshll.u32 %s471_s12, 4  ;;  %s472_s17 = smov [#allocation4]   ;;  %s17_s13 = int_to_ptr.vmem [resolvable:$true] %s16_s13 }
   0x4   :  { %19 = dma.hbm_to_vmem [thread:$0]  %s15_s11, 256, %s17_s13, [#allocation3]  }
   0x5   :  { %s27_s18 = sshll.u32 %s472_s17, 4  ;;  %s28_s18 = int_to_ptr.vmem [resolvable:$true] %s27_s18 }
   0x6   :  { %30 = dma.hbm_to_vmem [thread:$0]  %s26_s16, 128, %s28_s18, [#allocation5]  }
   0x7   :  { %467 = dma.done.wait [#allocation3], 256  }
   0x8   :  { %468 = vsyncadd [#allocation3], 4294967040 }
   0x9   :  { %469 = dma.done.wait [#allocation5], 128  }
   0xa   :  { %470 = vsyncadd [#allocation5], 4294967168  ;;  %v473_v0 = vmov 0   ;;  %v474_v1 = vmov 2   ;;  %v502_v2 = vld [vmem:[#allocation2] sm:$0xff]  ;;  %v504_v3 = vld [vmem:[#allocation2 + $0x8] sm:$0xff]  ;;  %v42_v12 = vlaneseq }
   0xb   :  { %330 = vset.pattern.permute.xlu1 %v473_v0  ;;  %332 = vset.pattern.permute.xlu0 %v474_v1  ;;  %v41_v4 = vld [vmem:[#allocation4] sm:$0xff]  ;;  %v45_v5 = vmax.f32 %v502_v2, %v504_v3  ;;  %v475_v6 = vmov 1   ;;  %v476_v7 = vmov 4   ;;  %v477_v8 = vmov 3  }
   0xc   :  { %66 = vperm.xlu1 %330, %v41_v4   ;;  %331 = vset.pattern.permute.xlu2 %v475_v6  ;;  %v478_v9 = vmov 7   ;;  %v479_v10 = vmov 5   ;;  %v480_v11 = vmov 6   ;;  %v508_v13 = vand.u32 127, %v42_v12 }
   0xd   :  { %94 = vperm.xlu2 %331, %v41_v4   ;;  %46 = vmax.xlane.f32.xlu0 %v45_v5 }
   0xe   :  { %v511_v15 = vadd.s32 128, %v508_v13 }
  0x14   :  { %334 = vset.pattern.permute.xlu1 %v476_v7 }
  0x15   :  { %181 = vperm.xlu1 %334, %v41_v4   ;;  %333 = vset.pattern.permute.xlu2 %v477_v8 }
  0x16   :  { %152 = vperm.xlu2 %333, %v41_v4  }
  0x1e   :  { %337 = vset.pattern.permute.xlu2 %v478_v9 }
  0x1f   :  { %268 = vperm.xlu2 %337, %v41_v4  }
  0x21   :  { %123 = vperm.xlu0 %332, %v41_v4  }
  0x29   :  { %335 = vset.pattern.permute.xlu0 %v479_v10 }
  0x2a   :  { %210 = vperm.xlu0 %335, %v41_v4  }
  0x32   :  { %336 = vset.pattern.permute.xlu0 %v480_v11 }
  0x33   :  { %239 = vperm.xlu0 %336, %v41_v4  }
  0x3b   :  { %338 = vset.pattern.permute.xlu0 %v478_v9 }
  0x67   :  { %v95_v14 = vpop.permute.xlu2 %94 }
  0x68   :  { %vm96_vm0 = vcmp.eq.s32.totalorder %v508_v13, %v95_v14  ;;  %vm97_vm1 = vcmp.eq.s32.totalorder %v511_v15, %v95_v14 }
  0x69   :  { %v98_v16 = vsel %vm96_vm0, %v502_v2, 0.0  ;;  %v99_v17 = vsel %vm97_vm1, %v504_v3, 0.0  ;;  %vm312_vm0 = vcmask 7168  }
  0x6a   :  { %v100_v18 = vadd.f32 %v99_v17, %v98_v16 }
  0x6c   :  { %101 = vadd.xlane.f32.xlu2 %v100_v18 }
  0x70   :  { %v153_v19 = vpop.permute.xlu2 %152 }
  0x71   :  { %vm154_vm2 = vcmp.eq.s32.totalorder %v508_v13, %v153_v19  ;;  %vm155_vm3 = vcmp.eq.s32.totalorder %v511_v15, %v153_v19 }
  0x72   :  { %v156_v20 = vsel %vm154_vm2, %v502_v2, 0.0  ;;  %v157_v21 = vsel %vm155_vm3, %v504_v3, 0.0 }
  0x73   :  { %v158_v22 = vadd.f32 %v157_v21, %v156_v20 }
  0x75   :  { %159 = vadd.xlane.f32.xlu2 %v158_v22 }
  0x79   :  { %v269_v45 = vpop.permute.xlu2 %268 }
  0x7a   :  { %vm270_vm12 = vcmp.eq.s32.totalorder %v508_v13, %v269_v45  ;;  %vm271_vm13 = vcmp.eq.s32.totalorder %v511_v15, %v269_v45 }
  0x7b   :  { %v272_v49 = vsel %vm270_vm12, %v502_v2, 0.0  ;;  %v273_v50 = vsel %vm271_vm13, %v504_v3, 0.0 }
  0x7c   :  { %v274_v52 = vadd.f32 %v273_v50, %v272_v49 }
  0x7e   :  { %v67_v23 = vpop.permute.xlu1 %66 }
  0x7f   :  { %vm68_vm4 = vcmp.eq.s32.totalorder %v508_v13, %v67_v23  ;;  %vm69_vm5 = vcmp.eq.s32.totalorder %v511_v15, %v67_v23 }
  0x80   :  { %v70_v24 = vsel %vm68_vm4, %v502_v2, 0.0  ;;  %v71_v25 = vsel %vm69_vm5, %v504_v3, 0.0  ;;  %v47_v26 = vpop.xlane.xlu0 %46 }
  0x81   :  { %v72_v27 = vadd.f32 %v71_v25, %v70_v24  ;;  %v525_v28 = vmax.f32 %v47_v26, 0.0 }
  0x83   :  { %73 = vadd.xlane.f32.xlu1 %v72_v27  ;;  %v49_v29 = vsub.f32 %v502_v2, %v525_v28  ;;  %v50_v30 = vsub.f32 %v504_v3, %v525_v28 }
  0x85   :  { %v51_v31 = vmul.f32 1.442695, %v49_v29  ;;  %v53_v32 = vmul.f32 1.442695, %v50_v30 }
  0x87   :  { %339 = vpow2.f32 %v51_v31  ;;  %v182_v33 = vpop.permute.xlu1 %181 }
  0x88   :  { %341 = vpow2.f32 %v53_v32  ;;  %vm183_vm6 = vcmp.eq.s32.totalorder %v508_v13, %v182_v33  ;;  %vm184_vm7 = vcmp.eq.s32.totalorder %v511_v15, %v182_v33 }
  0x89   :  { %v185_v37 = vsel %vm183_vm6, %v502_v2, 0.0  ;;  %v186_v38 = vsel %vm184_vm7, %v504_v3, 0.0 }
  0x8a   :  { %v187_v42 = vadd.f32 %v186_v38, %v185_v37 }
  0x8d   :  { %v340_v34 = vpop.eup %339 }
  0x8e   :  { %v342_v35 = vpop.eup %341 }
  0x8f   :  { %v55_v36 = vadd.f32 %v342_v35, %v340_v34 }
  0x91   :  { %56 = vadd.xlane.f32.xlu0 %v55_v36 }
  0x93   :  { %v124_v39 = vpop.permute.xlu0 %123 }
  0x94   :  { %vm125_vm8 = vcmp.eq.s32.totalorder %v508_v13, %v124_v39  ;;  %vm126_vm9 = vcmp.eq.s32.totalorder %v511_v15, %v124_v39 }
  0x95   :  { %v127_v40 = vsel %vm125_vm8, %v502_v2, 0.0  ;;  %v128_v41 = vsel %vm126_vm9, %v504_v3, 0.0 }
  0x96   :  { %v129_v43 = vadd.f32 %v128_v41, %v127_v40 }
  0x98   :  { %130 = vadd.xlane.f32.xlu1 %v129_v43 }
  0x99   :  { %188 = vadd.xlane.f32.xlu0 %v187_v42 }
  0x9c   :  { %v211_v44 = vpop.permute.xlu0 %210 }
  0x9d   :  { %vm212_vm10 = vcmp.eq.s32.totalorder %v508_v13, %v211_v44  ;;  %vm213_vm11 = vcmp.eq.s32.totalorder %v511_v15, %v211_v44 }
  0x9e   :  { %v214_v46 = vsel %vm212_vm10, %v502_v2, 0.0  ;;  %v215_v47 = vsel %vm213_vm11, %v504_v3, 0.0 }
  0x9f   :  { %v216_v48 = vadd.f32 %v215_v47, %v214_v46 }
  0xa1   :  { %217 = vadd.xlane.f32.xlu1 %v216_v48 }
  0xa5   :  { %v240_v51 = vpop.permute.xlu0 %239 }
  0xa6   :  { %vm241_vm14 = vcmp.eq.s32.totalorder %v508_v13, %v240_v51  ;;  %vm242_vm15 = vcmp.eq.s32.totalorder %v511_v15, %v240_v51 }
  0xa7   :  { %v243_v53 = vsel %vm241_vm14, %v502_v2, 0.0  ;;  %v244_v54 = vsel %vm242_vm15, %v504_v3, 0.0 }
  0xa8   :  { %v245_v55 = vadd.f32 %v244_v54, %v243_v53 }
  0xa9   :  { %275 = vadd.xlane.f32.xlu1 %v274_v52 }
  0xaa   :  { %246 = vadd.xlane.f32.xlu2 %v245_v55 }
  0xdf   :  { %v102_v59 = vpop.xlane.xlu2 %101 }
  0xe0   :  { %v103_v1 = vsub.f32 0.0, %v102_v59 }
  0xe8   :  { %v160_v21 = vpop.xlane.xlu2 %159 }
  0xe9   :  { %v161_v34 = vsub.f32 0.0, %v160_v21 }
  0xf6   :  { %v74_v56 = vpop.xlane.xlu1 %73 }
  0xf7   :  { %v84_v57 = vmax.f32 %v74_v56, -1e+12  ;;  %v75_v60 = vsub.f32 0.0, %v74_v56 }
  0xf9   :  { %v85_v58 = vsub.f32 -1e+12, %v84_v57  ;;  %v89_v62 = vsub.f32 %v74_v56, %v84_v57  ;;  %v113_v63 = vmax.f32 %v84_v57, %v102_v59  ;;  %v76_v0 = vmax.f32 %v75_v60, 0.0 }
  0xfb   :  { %v86_v61 = vmul.f32 1.442695, %v85_v58  ;;  %v90_v4 = vmul.f32 1.442695, %v89_v62  ;;  %v114_v5 = vsub.f32 %v84_v57, %v113_v63  ;;  %v77_v6 = vsub.f32 0.0, %v76_v0 }
  0xfc   :  { %v80_v2 = vsub.f32 %v75_v60, %v76_v0  ;;  %v104_v7 = vmax.f32 %v76_v0, %v103_v1  ;;  %v118_v8 = vsub.f32 %v102_v59, %v113_v63 }
  0xfd   :  { %343 = vpow2.f32 %v86_v61  ;;  %v115_v3 = vmul.f32 1.442695, %v114_v5  ;;  %v78_v11 = vmul.f32 1.442695, %v77_v6 }
  0xfe   :  { %345 = vpow2.f32 %v90_v4  ;;  %v81_v12 = vmul.f32 1.442695, %v80_v2  ;;  %v105_v13 = vsub.f32 %v76_v0, %v104_v7  ;;  %v119_v14 = vmul.f32 1.442695, %v118_v8 }
  0xff   :  { %347 = vpow2.f32 %v115_v3  ;;  %v109_v18 = vsub.f32 %v103_v1, %v104_v7 }
 0x100   :  { %349 = vpow2.f32 %v78_v11  ;;  %v106_v22 = vmul.f32 1.442695, %v105_v13 }
 0x101   :  { %351 = vpow2.f32 %v81_v12  ;;  %v110_v31 = vmul.f32 1.442695, %v109_v18 }
 0x102   :  { %353 = vpow2.f32 %v119_v14 }
 0x103   :  { %v344_v10 = vpop.eup %343  ;;  %355 = vpow2.f32 %v106_v22 }
 0x104   :  { %v551_v9 = vpop.xlane.xlu0 %56  ;;  %v88_v15 = vmul.f32 0.0, %v344_v10  ;;  %v346_v17 = vpop.eup %345  ;;  %v58_v10 = vsub.f32 0.0, %v525_v28 }
 0x105   :  { %v348_v30 = vpop.eup %347 }
 0x106   :  { %v92_v26 = vadd.f32 %v346_v17, %v88_v15  ;;  %v350_v38 = vpop.eup %349 }
 0x107   :  { %v352_v40 = vpop.eup %351 }
 0x108   :  { %v117_v41 = vmul.f32 %v348_v30, %v92_v26  ;;  %v354_v44 = vpop.eup %353  ;;  %v83_v50 = vadd.f32 %v352_v40, %v350_v38 }
 0x109   :  { %v356_v52 = vpop.eup %355 }
 0x10a   :  { %v121_v53 = vadd.f32 %v354_v44, %v117_v41 }
 0x10b   :  { %v131_v16 = vpop.xlane.xlu1 %130 }
 0x10c   :  { %v132_v19 = vsub.f32 0.0, %v131_v16  ;;  %v142_v20 = vmax.f32 %v113_v63, %v131_v16  ;;  %v553_v29 = vpop.xlane.xlu0 %188 }
 0x10d   :  { %v190_v54 = vsub.f32 0.0, %v553_v29 }
 0x10e   :  { %v133_v23 = vmax.f32 %v104_v7, %v132_v19  ;;  %v143_v24 = vsub.f32 %v113_v63, %v142_v20  ;;  %v147_v25 = vsub.f32 %v131_v16, %v142_v20  ;;  %v171_v27 = vmax.f32 %v142_v20, %v160_v21 }
 0x10f   :  { %v108_v63 = vmul.f32 %v356_v52, %v83_v50 }
 0x110   :  { %v134_v32 = vsub.f32 %v104_v7, %v133_v23  ;;  %v144_v33 = vmul.f32 1.442695, %v143_v24  ;;  %v148_v35 = vmul.f32 1.442695, %v147_v25  ;;  %v172_v36 = vsub.f32 %v142_v20, %v171_v27 }
 0x111   :  { %v176_v37 = vsub.f32 %v160_v21, %v171_v27  ;;  %v200_v39 = vmax.f32 %v171_v27, %v553_v29  ;;  %v138_v45 = vsub.f32 %v132_v19, %v133_v23  ;;  %v558_v48 = vmax.f32 %v133_v23, %v161_v34 }
 0x112   :  { %357 = vpow2.f32 %v144_v33  ;;  %v135_v42 = vmul.f32 1.442695, %v134_v32  ;;  %v173_v43 = vmul.f32 1.442695, %v172_v36 }
 0x113   :  { %359 = vpow2.f32 %v148_v35  ;;  %v201_v46 = vsub.f32 %v171_v27, %v200_v39  ;;  %v177_v49 = vmul.f32 1.442695, %v176_v37  ;;  %v205_v51 = vsub.f32 %v553_v29, %v200_v39 }
 0x114   :  { %v556_v47 = vpop.xlane.xlu1 %217  ;;  %361 = vpow2.f32 %v110_v31  ;;  %v139_v57 = vmul.f32 1.442695, %v138_v45  ;;  %v163_v60 = vsub.f32 %v133_v23, %v558_v48  ;;  %v167_v6 = vsub.f32 %v161_v34, %v558_v48 }
 0x115   :  { %363 = vpow2.f32 %v173_v43  ;;  %v229_v55 = vmax.f32 %v200_v39, %v556_v47  ;;  %v202_v58 = vmul.f32 1.442695, %v201_v46  ;;  %v206_v0 = vmul.f32 1.442695, %v205_v51 }
 0x116   :  { %365 = vpow2.f32 %v135_v42  ;;  %v567_v2 = vmax.f32 %v558_v48, %v190_v54  ;;  %v164_v11 = vmul.f32 1.442695, %v163_v60  ;;  %v168_v19 = vmul.f32 1.442695, %v167_v6 }
 0x117   :  { %367 = vpow2.f32 %v177_v49  ;;  %v230_v61 = vsub.f32 %v200_v39, %v229_v55  ;;  %v234_v1 = vsub.f32 %v556_v47, %v229_v55  ;;  %v219_v24 = vsub.f32 0.0, %v556_v47 }
 0x118   :  { %v358_v56 = vpop.eup %357  ;;  %369 = vpow2.f32 %v202_v58  ;;  %v192_v20 = vsub.f32 %v558_v48, %v567_v2  ;;  %v59_v29 = vmul.f32 1.442695, %v58_v10  ;;  %v196_v37 = vsub.f32 %v190_v54, %v567_v2 }
 0x119   :  { %v146_v59 = vmul.f32 %v358_v56, %v121_v53  ;;  %v360_v62 = vpop.eup %359  ;;  %v231_v3 = vmul.f32 1.442695, %v230_v61  ;;  %371 = vpow2.f32 %v139_v57  ;;  %v235_v15 = vmul.f32 1.442695, %v234_v1 }
 0x11a   :  { %v362_v4 = vpop.eup %361  ;;  %373 = vpow2.f32 %v206_v0  ;;  %v193_v38 = vmul.f32 1.442695, %v192_v20  ;;  %v220_v40 = vmax.f32 %v567_v2, %v219_v24  ;;  %v197_v49 = vmul.f32 1.442695, %v196_v37 }
 0x11b   :  { %v150_v5 = vadd.f32 %v360_v62, %v146_v59  ;;  %v364_v7 = vpop.eup %363  ;;  %v112_v14 = vadd.f32 %v362_v4, %v108_v63  ;;  %375 = vpow2.f32 %v231_v3 }
 0x11c   :  { %v366_v8 = vpop.eup %365  ;;  %v573_v17 = vpop.xlane.xlu1 %275  ;;  %377 = vpow2.f32 %v164_v11  ;;  %v221_v52 = vsub.f32 %v567_v2, %v220_v40  ;;  %v225_v59 = vsub.f32 %v219_v24, %v220_v40 }
 0x11d   :  { %v175_v12 = vmul.f32 %v364_v7, %v150_v5  ;;  %v570_v13 = vpop.xlane.xlu2 %246  ;;  %v368_v18 = vpop.eup %367  ;;  %v137_v21 = vmul.f32 %v366_v8, %v112_v14  ;;  %379 = vpow2.f32 %v235_v15  ;;  %v277_v4 = vsub.f32 0.0, %v573_v17 }
 0x11e   :  { %v258_v16 = vmax.f32 %v229_v55, %v570_v13  ;;  %v370_v27 = vpop.eup %369  ;;  %381 = vpow2.f32 %v168_v19  ;;  %v248_v41 = vsub.f32 0.0, %v570_v13  ;;  %v222_v61 = vmul.f32 1.442695, %v221_v52 }
 0x11f   :  { %v179_v22 = vadd.f32 %v368_v18, %v175_v12  ;;  %v372_v31 = vpop.eup %371  ;;  %v226_v2 = vmul.f32 1.442695, %v225_v59 }
 0x120   :  { %v259_v23 = vsub.f32 %v229_v55, %v258_v16  ;;  %v263_v25 = vsub.f32 %v570_v13, %v258_v16  ;;  %v580_v26 = vmax.f32 %v258_v16, %v573_v17  ;;  %v374_v35 = vpop.eup %373  ;;  %v141_v36 = vadd.f32 %v372_v31, %v137_v21 }
 0x121   :  { %v204_v32 = vmul.f32 %v370_v27, %v179_v22  ;;  %v376_v42 = vpop.eup %375  ;;  %v249_v54 = vmax.f32 %v220_v40, %v248_v41 }
 0x122   :  { %v260_v30 = vmul.f32 1.442695, %v259_v23  ;;  %v264_v33 = vmul.f32 1.442695, %v263_v25  ;;  %v288_v34 = vsub.f32 %v258_v16, %v580_v26  ;;  %v292_v44 = vsub.f32 %v573_v17, %v580_v26  ;;  %v378_v45 = vpop.eup %377 }
 0x123   :  { %v208_v39 = vadd.f32 %v374_v35, %v204_v32  ;;  %v380_v47 = vpop.eup %379  ;;  %v166_v48 = vmul.f32 %v378_v45, %v141_v36  ;;  %v250_v62 = vsub.f32 %v220_v40, %v249_v54  ;;  %v254_v11 = vsub.f32 %v248_v41, %v249_v54 }
 0x124   :  { %383 = vpow2.f32 %v260_v30  ;;  %v289_v43 = vmul.f32 1.442695, %v288_v34  ;;  %v293_v50 = vmul.f32 1.442695, %v292_v44  ;;  %v382_v51 = vpop.eup %381  ;;  %v278_v12 = vmax.f32 %v249_v54, %v277_v4 }
 0x125   :  { %385 = vpow2.f32 %v264_v33  ;;  %v233_v46 = vmul.f32 %v376_v42, %v208_v39  ;;  %v170_v58 = vadd.f32 %v382_v51, %v166_v48  ;;  %v251_v7 = vmul.f32 1.442695, %v250_v62 }
 0x126   :  { %387 = vpow2.f32 %v59_v29  ;;  %v255_v15 = vmul.f32 1.442695, %v254_v11  ;;  %v279_v16 = vsub.f32 %v249_v54, %v278_v12  ;;  %v283_v23 = vsub.f32 %v277_v4, %v278_v12 }
 0x127   :  { %389 = vpow2.f32 %v193_v38  ;;  %v237_v53 = vadd.f32 %v380_v47, %v233_v46 }
 0x128   :  { %391 = vpow2.f32 %v289_v43  ;;  %v280_v22 = vmul.f32 1.442695, %v279_v16  ;;  %v284_v31 = vmul.f32 1.442695, %v283_v23 }
 0x129   :  { %393 = vpow2.f32 %v293_v50 }
 0x12a   :  { %v384_v55 = vpop.eup %383  ;;  %395 = vpow2.f32 %v197_v49 }
 0x12b   :  { %v262_v56 = vmul.f32 %v384_v55, %v237_v53  ;;  %v386_v57 = vpop.eup %385  ;;  %397 = vpow2.f32 %v222_v61 }
 0x12c   :  { %v388_v60 = vpop.eup %387 }
 0x12d   :  { %v266_v63 = vadd.f32 %v386_v57, %v262_v56  ;;  %v61_v0 = vadd.f32 %v388_v60, %v551_v9  ;;  %v390_v1 = vpop.eup %389 }
 0x12e   :  { %v392_v5 = vpop.eup %391  ;;  %v195_v6 = vmul.f32 %v390_v1, %v170_v58 }
 0x12f   :  { %v291_v3 = vmul.f32 %v392_v5, %v266_v63  ;;  %v394_v8 = vpop.eup %393  ;;  %399 = vlog2.f32 %v61_v0 }
 0x130   :  { %v396_v10 = vpop.eup %395  ;;  %401 = vpow2.f32 %v226_v2 }
 0x131   :  { %v295_v13 = vadd.f32 %v394_v8, %v291_v3  ;;  %v199_v14 = vadd.f32 %v396_v10, %v195_v6  ;;  %403 = vpow2.f32 %v251_v7  ;;  %v398_v9 = vpop.eup %397 }
 0x133   :  { %405 = vlog2.f32 %v295_v13  ;;  %v224_v18 = vmul.f32 %v398_v9, %v199_v14 }
 0x134   :  { %407 = vpow2.f32 %v255_v15 }
 0x135   :  { %v400_v17 = vpop.eup %399  ;;  %409 = vpow2.f32 %v280_v22 }
 0x136   :  { %v402_v19 = vpop.eup %401  ;;  %v63_v21 = vmul.f32 0.6931472, %v400_v17  ;;  %411 = vpow2.f32 %v284_v31 }
 0x137   :  { %v404_v20 = vpop.eup %403  ;;  %v228_v25 = vadd.f32 %v402_v19, %v224_v18 }
 0x138   :  { %v64_v30 = vadd.f32 %v63_v21, %v525_v28 }
 0x139   :  { %v406_v24 = vpop.eup %405  ;;  %v253_v29 = vmul.f32 %v404_v20, %v228_v25 }
 0x13a   :  { %v300_v27 = vmul.f32 0.6931472, %v406_v24  ;;  %v408_v33 = vpop.eup %407 }
 0x13b   :  { %v257_v35 = vadd.f32 %v408_v33, %v253_v29  ;;  %v410_v37 = vpop.eup %409 }
 0x13c   :  { %v301_v32 = vadd.f32 %v300_v27, %v580_v26  ;;  %v412_v39 = vpop.eup %411 }
 0x13d   :  { %v282_v38 = vmul.f32 %v410_v37, %v257_v35 }
 0x13e   :  { %v302_v34 = vsub.f32 %v301_v32, %v64_v30 }
 0x13f   :  { %v286_v40 = vadd.f32 %v412_v39, %v282_v38 }
 0x140   :  { %v303_v36 = vmul.f32 1.442695, %v302_v34 }
 0x142   :  { %413 = vpow2.f32 %v303_v36 }
 0x143   :  { %415 = vlog2.f32 %v286_v40 }
 0x148   :  { %v414_v41 = vpop.eup %413 }
 0x149   :  { %v305_v42 = vsub.f32 1.0, %v414_v41  ;;  %v416_v28 = vpop.eup %415 }
 0x14a   :  { %v297_v45 = vmul.f32 0.6931472, %v416_v28 }
 0x14b   :  { %v306_v43 = vmax.f32 %v305_v42, 1e-07 }
 0x14c   :  { %v298_v47 = vadd.f32 %v297_v45, %v278_v12 }
 0x14d   :  { %v307_v44 = vmin.f32 %v306_v43, 1.0 }
 0x14f   :  { %417 = vlog2.f32 %v307_v44 }
 0x155   :  { %v418_v46 = vpop.eup %417 }
 0x156   :  { %v309_v26 = vmul.f32 0.6931472, %v418_v46 }
 0x158   :  { %v310_v48 = vadd.f32 %v309_v26, %v64_v30 }
 0x15a   :  { %v311_v49 = vadd.f32 %v310_v48, %v298_v47 }
 0x15c   :  { %313 = vst.msk [vmem:[%s598_s2] sm:$0xff] %vm312_vm0, %v311_v49 }
 0x15d   :  { %318 = vsyncpa [#allocation3], 1 }
 0x15e   :  { %319 = vsyncpa [#allocation5], 1 }

</bundles_post_ra>
